<compile_context>
chip_gen: v7x
topology: tpu7x:2x2x1
jax: 0.10.0
libtpu: 0.0.40
codegen_flags: <defaults>
</compile_context>

<pallas_src>
import functools

import jax
import jax.numpy as jnp
from jax.experimental import pallas as pl
from jax.experimental.pallas import tpu as pltpu


def _round_up(x: int, m: int) -> int:
    return pl.cdiv(x, m) * m


# ----------------------------------------------------------------------------- kernel
def _fused_mlp_kernel(*refs, num_layers: int):
    """Fused MLP: refs = (x_ref, w0, b0, w1, b1, ..., o_ref).

    x_ref: (TM, D0_pad)        bf16 VMEM row tile
    w_i  : (Di_pad, Di+1_pad)  bf16 VMEM (full, resident across the grid)
    b_i  : (1, Di+1_pad)       f32  VMEM
    o_ref: (TM, out_dim)       out-dtype VMEM row tile (real, unpadded width)
    """
    x_ref = refs[0]
    o_ref = refs[-1]
    wb = refs[1:-1]

    h = x_ref[...]                                    # bf16
    for i in range(num_layers):                       # unrolled at trace time
        w = wb[2 * i][...]
        b = wb[2 * i + 1][...]
        # MXU matmul with f32 accumulation; bias + ReLU epilogue in f32 (VPU).
        y = jnp.dot(h, w, preferred_element_type=jnp.float32) + b
        if i < num_layers - 1:
            h = jnp.maximum(y, 0.0).astype(w.dtype)   # back to bf16 for next matmul
        else:
            h = y                                     # keep f32 for final cast
    out_dim = o_ref.shape[-1]
    o_ref[...] = h[:, :out_dim].astype(o_ref.dtype)   # drop padded lanes at the store


# ----------------------------------------------------------------------------- params
def prepare_mlp_params(params, compute_dtype=jnp.bfloat16):
    """One-time padding/cast of weights (hoisted out of the forward path).

    params: list of (W(in,out), b(1,out)).
    Returns (padded_wb_tuple, out_dim): weights zero-padded to 128-multiples and
    cast to compute_dtype, biases zero-padded and kept f32.
    """
    padded_wb = []
    total_w_bytes = 0
    for (w, b) in params:
        di, do = w.shape
        dip, dop = _round_up(di, 128), _round_up(do, 128)
        wp = jnp.zeros((dip, dop), compute_dtype).at[:di, :do].set(w.astype(compute_dtype))
        bp = jnp.zeros((1, dop), jnp.float32).at[:, :do].set(
            b.reshape(1, -1).astype(jnp.float32))
        padded_wb.extend([wp, bp])
        total_w_bytes += dip * dop * jnp.dtype(compute_dtype).itemsize
    # Weights stay VMEM-resident; Pallas double-buffers each input spec, so the real
    # footprint is ~2x this. Keep well under v7x's 32 MiB scoped default.
    assert 2 * total_w_bytes < 12 * 1024 * 1024, \
        "weights too large for fused VMEM-resident MLP; tile K/N instead"
    out_dim = params[-1][0].shape[1]
    return tuple(padded_wb), int(out_dim)


def _pick_tm(n: int, tm_max: int = 512) -> int:
    """Row tile: >=2 balanced tiles (keeps both v7x TCs busy), capped at tm_max.

    The extra grid step costs ~0.35 us on single-TC v5e/v6e - negligible.
    """
    n8 = max(8, _round_up(n, 8))
    if n8 >= 16:
        tm = _round_up(pl.cdiv(n8, 2), 8)
    else:
        tm = n8
    return min(tm_max, tm)


# ----------------------------------------------------------------------------- forward
def mlp_forward(x, padded_wb, *, out_dim, tm=None, compute_dtype=jnp.bfloat16):
    """Fused-MLP forward. x: (N, input_dim). padded_wb from prepare_mlp_params."""
    n, d_in = x.shape
    num_layers = len(padded_wb) // 2
    d0_pad = padded_wb[0].shape[0]

    if tm is None:
        tm = _pick_tm(n)
    tm = max(8, min(tm, _round_up(max(n, 1), 8)))
    n_pad = _round_up(max(n, 1), tm)

    # Single fusible pad + cast of x (rows to n_pad, lanes to 128-multiple).
    xp = jnp.pad(x.astype(compute_dtype), ((0, n_pad - n), (0, d0_pad - d_in)))

    grid = (n_pad // tm,)
    in_specs = [pl.BlockSpec((tm, d0_pad), lambda i: (i, 0))]           # x row tile
    for li in range(num_layers):
        wshape = padded_wb[2 * li].shape
        bshape = padded_wb[2 * li + 1].shape
        in_specs.append(pl.BlockSpec(wshape, lambda i: (0, 0)))         # full weight
        in_specs.append(pl.BlockSpec(bshape, lambda i: (0, 0)))         # bias row
    out_specs = pl.BlockSpec((tm, out_dim), lambda i: (i, 0))           # real width

    # Advisory cost hint: this custom call is tiny.
    flops = 2 * n_pad * sum(int(w.shape[0]) * int(w.shape[1]) for w in padded_wb[0::2])
    bytes_accessed = (
        int(xp.size) * xp.dtype.itemsize
        + sum(int(a.size) * a.dtype.itemsize for a in padded_wb)
        + n_pad * out_dim * jnp.dtype(x.dtype).itemsize)
    cost = pl.CostEstimate(flops=flops, transcendentals=0, bytes_accessed=bytes_accessed)

    kernel = functools.partial(_fused_mlp_kernel, num_layers=num_layers)
    out_padded = pl.pallas_call(
        kernel,
        out_shape=jax.ShapeDtypeStruct((n_pad, out_dim), x.dtype),
        grid_spec=pltpu.PrefetchScalarGridSpec(
            num_scalar_prefetch=0,
            grid=grid,
            in_specs=in_specs,
            out_specs=out_specs,
        ),
        compiler_params=pltpu.CompilerParams(
            dimension_semantics=("parallel",),   # row tiles shard across v7x's 2 TCs
        ),
        cost_estimate=cost,
    )(xp, *padded_wb)

    return out_padded[:n]


# ----------------------------------------------------------------------------- helpers
def init_mlp_params(key, input_dim, hidden_dim, output_dim, num_layers,
                    dtype=jnp.float32):
    """nn.Linear-style init. W stored (in, out); b stored (1, out)."""
    h = [hidden_dim] * (num_layers - 1)
    dims_in = [input_dim] + h
    dims_out = h + [output_dim]
    params = []
    for n_in, n_out in zip(dims_in, dims_out):
        key, kw, kb = jax.random.split(key, 3)
        bound = 1.0 / jnp.sqrt(jnp.asarray(n_in, dtype=jnp.float32))
        w = jax.random.uniform(kw, (n_in, n_out), dtype=dtype, minval=-bound, maxval=bound)
        b = jax.random.uniform(kb, (1, n_out), dtype=dtype, minval=-bound, maxval=bound)
        params.append((w, b))
    return params


def mlp_reference(x, params, compute_dtype=jnp.bfloat16):
    """Pure-JAX reference mirroring the kernel's bf16-operand / f32-accum math."""
    num_layers = len(params)
    h = x.astype(compute_dtype)
    for i, (w, b) in enumerate(params):
        y = jnp.dot(h, w.astype(compute_dtype),
                    preferred_element_type=jnp.float32) + b.astype(jnp.float32)
        if i < num_layers - 1:
            h = jnp.maximum(y, 0.0).astype(compute_dtype)
        else:
            h = y
    return h.astype(x.dtype)


if __name__ == "__main__":
    key = jax.random.PRNGKey(0)
    key, kx = jax.random.split(key)

    # Small shapes consistent with the head module (2-D input (N, input_dim)).
    # batch=200 is deliberately not a multiple of 8/128 to exercise padding + tm pick.
    batch = 200
    input_dim = 32
    hidden_dim = 32
    output_dim = 16
    num_layers = 3

    x = jax.random.normal(kx, (batch, input_dim), dtype=jnp.float32)
    params = init_mlp_params(key, input_dim, hidden_dim, output_dim, num_layers)

    # One-time weight padding/cast (hoisted out of the per-call path).
    padded_wb, out_dim = prepare_mlp_params(params)

    fwd = jax.jit(mlp_forward, static_argnames=("out_dim", "tm", "compute_dtype"))
    out = fwd(x, padded_wb, out_dim=out_dim)
    out = jax.block_until_ready(out)

    ref = mlp_reference(x, params)
    assert out.shape == (batch, output_dim)
    assert jnp.allclose(out, ref, atol=1e-2, rtol=1e-2), \
        f"max abs diff {jnp.max(jnp.abs(out - ref))}"

    print("KERNEL_OK")
</pallas_src>

<mosaic_0001>
module attributes {stable_mosaic.version = 11 : i64} {
  func.func @_fused_mlp_kernel(%arg0: i32, %arg1: memref<104x128xbf16, #tpu.memory_space<vmem>>, %arg2: memref<128x128xbf16, #tpu.memory_space<vmem>>, %arg3: memref<1x128xf32, #tpu.memory_space<vmem>>, %arg4: memref<128x128xbf16, #tpu.memory_space<vmem>>, %arg5: memref<1x128xf32, #tpu.memory_space<vmem>>, %arg6: memref<128x128xbf16, #tpu.memory_space<vmem>>, %arg7: memref<1x128xf32, #tpu.memory_space<vmem>>, %arg8: memref<104x16xf32, #tpu.memory_space<vmem>>) attributes {dimension_semantics = [#tpu.dimension_semantics<parallel>], iteration_bounds = array<i64: 2>, scalar_prefetch = 0 : i64, scratch_operands = 0 : i64, tpu.core_type = #tpu.core_type<tc>, window_params = [{transform_indices = @transform_0, window_bounds = array<i64: 104, 128>}, {pipeline_mode = #tpu.pipeline_mode<synchronous>, transform_indices = @transform_1, window_bounds = array<i64: 128, 128>}, {pipeline_mode = #tpu.pipeline_mode<synchronous>, transform_indices = @transform_2, window_bounds = array<i64: 1, 128>}, {pipeline_mode = #tpu.pipeline_mode<synchronous>, transform_indices = @transform_3, window_bounds = array<i64: 128, 128>}, {pipeline_mode = #tpu.pipeline_mode<synchronous>, transform_indices = @transform_4, window_bounds = array<i64: 1, 128>}, {pipeline_mode = #tpu.pipeline_mode<synchronous>, transform_indices = @transform_5, window_bounds = array<i64: 128, 128>}, {pipeline_mode = #tpu.pipeline_mode<synchronous>, transform_indices = @transform_6, window_bounds = array<i64: 1, 128>}, {transform_indices = @transform_7, window_bounds = array<i64: 104, 16>}]} {
    %c0 = arith.constant 0 : index
    %c0_0 = arith.constant 0 : index
    %0 = vector.load %arg1[%c0, %c0_0] : memref<104x128xbf16, #tpu.memory_space<vmem>>, vector<104x128xbf16>
    %c0_1 = arith.constant 0 : index
    %c0_2 = arith.constant 0 : index
    %1 = vector.load %arg2[%c0_1, %c0_2] : memref<128x128xbf16, #tpu.memory_space<vmem>>, vector<128x128xbf16>
    %c0_3 = arith.constant 0 : index
    %c0_4 = arith.constant 0 : index
    %2 = vector.load %arg3[%c0_3, %c0_4] : memref<1x128xf32, #tpu.memory_space<vmem>>, vector<1x128xf32>
    %cst = arith.constant dense<0.000000e+00> : vector<104x128xf32>
    %3 = tpu.matmul %0, %1, %cst {dimension_numbers = #tpu.dot_dimension_numbers<[1], [0], [0], [1], [0, 0, 1, 1], [], []>} : vector<104x128xbf16>, vector<128x128xbf16>, vector<104x128xf32> -> vector<104x128xf32>
    %4 = vector.broadcast %2 : vector<1x128xf32> to vector<104x128xf32>
    %5 = arith.addf %3, %4 : vector<104x128xf32>
    %cst_5 = arith.constant 0.000000e+00 : f32
    %6 = vector.broadcast %cst_5 : f32 to vector<104x128xf32>
    %7 = arith.maximumf %5, %6 : vector<104x128xf32>
    %8 = arith.truncf %7 : vector<104x128xf32> to vector<104x128xbf16>
    %c0_6 = arith.constant 0 : index
    %c0_7 = arith.constant 0 : index
    %9 = vector.load %arg4[%c0_6, %c0_7] : memref<128x128xbf16, #tpu.memory_space<vmem>>, vector<128x128xbf16>
    %c0_8 = arith.constant 0 : index
    %c0_9 = arith.constant 0 : index
    %10 = vector.load %arg5[%c0_8, %c0_9] : memref<1x128xf32, #tpu.memory_space<vmem>>, vector<1x128xf32>
    %cst_10 = arith.constant dense<0.000000e+00> : vector<104x128xf32>
    %11 = tpu.matmul %8, %9, %cst_10 {dimension_numbers = #tpu.dot_dimension_numbers<[1], [0], [0], [1], [0, 0, 1, 1], [], []>} : vector<104x128xbf16>, vector<128x128xbf16>, vector<104x128xf32> -> vector<104x128xf32>
    %12 = vector.broadcast %10 : vector<1x128xf32> to vector<104x128xf32>
    %13 = arith.addf %11, %12 : vector<104x128xf32>
    %cst_11 = arith.constant 0.000000e+00 : f32
    %14 = vector.broadcast %cst_11 : f32 to vector<104x128xf32>
    %15 = arith.maximumf %13, %14 : vector<104x128xf32>
    %16 = arith.truncf %15 : vector<104x128xf32> to vector<104x128xbf16>
    %c0_12 = arith.constant 0 : index
    %c0_13 = arith.constant 0 : index
    %17 = vector.load %arg6[%c0_12, %c0_13] : memref<128x128xbf16, #tpu.memory_space<vmem>>, vector<128x128xbf16>
    %c0_14 = arith.constant 0 : index
    %c0_15 = arith.constant 0 : index
    %18 = vector.load %arg7[%c0_14, %c0_15] : memref<1x128xf32, #tpu.memory_space<vmem>>, vector<1x128xf32>
    %cst_16 = arith.constant dense<0.000000e+00> : vector<104x128xf32>
    %19 = tpu.matmul %16, %17, %cst_16 {dimension_numbers = #tpu.dot_dimension_numbers<[1], [0], [0], [1], [0, 0, 1, 1], [], []>} : vector<104x128xbf16>, vector<128x128xbf16>, vector<104x128xf32> -> vector<104x128xf32>
    %20 = vector.broadcast %18 : vector<1x128xf32> to vector<104x128xf32>
    %21 = arith.addf %19, %20 : vector<104x128xf32>
    %22 = vector.extract_strided_slice %21 {offsets = [0, 0], sizes = [104, 16], strides = [1, 1]} : vector<104x128xf32> to vector<104x16xf32>
    %c0_17 = arith.constant 0 : index
    %c0_18 = arith.constant 0 : index
    %23 = vector.load %arg8[%c0_17, %c0_18] : memref<104x16xf32, #tpu.memory_space<vmem>>, vector<104x16xf32>
    tpu.vector_store %arg8[%c0_17, %c0_18], %22 {strides = array<i32>} : memref<104x16xf32, #tpu.memory_space<vmem>>, vector<104x16xf32>,
    return
  }
  func.func @transform_0(%arg0: i32) -> (i32, i32) {
    %c0_i32 = arith.constant 0 : i32
    %c0_i32_0 = arith.constant 0 : i32
    return %arg0, %c0_i32 : i32, i32
  }
  func.func @transform_1(%arg0: i32) -> (i32, i32) {
    %c0_i32 = arith.constant 0 : i32
    %c0_i32_0 = arith.constant 0 : i32
    %c0_i32_1 = arith.constant 0 : i32
    return %c0_i32, %c0_i32_0 : i32, i32
  }
  func.func @transform_2(%arg0: i32) -> (i32, i32) {
    %c0_i32 = arith.constant 0 : i32
    %c0_i32_0 = arith.constant 0 : i32
    %c0_i32_1 = arith.constant 0 : i32
    return %c0_i32, %c0_i32_0 : i32, i32
  }
  func.func @transform_3(%arg0: i32) -> (i32, i32) {
    %c0_i32 = arith.constant 0 : i32
    %c0_i32_0 = arith.constant 0 : i32
    %c0_i32_1 = arith.constant 0 : i32
    return %c0_i32, %c0_i32_0 : i32, i32
  }
  func.func @transform_4(%arg0: i32) -> (i32, i32) {
    %c0_i32 = arith.constant 0 : i32
    %c0_i32_0 = arith.constant 0 : i32
    %c0_i32_1 = arith.constant 0 : i32
    return %c0_i32, %c0_i32_0 : i32, i32
  }
  func.func @transform_5(%arg0: i32) -> (i32, i32) {
    %c0_i32 = arith.constant 0 : i32
    %c0_i32_0 = arith.constant 0 : i32
    %c0_i32_1 = arith.constant 0 : i32
    return %c0_i32, %c0_i32_0 : i32, i32
  }
  func.func @transform_6(%arg0: i32) -> (i32, i32) {
    %c0_i32 = arith.constant 0 : i32
    %c0_i32_0 = arith.constant 0 : i32
    %c0_i32_1 = arith.constant 0 : i32
    return %c0_i32, %c0_i32_0 : i32, i32
  }
  func.func @transform_7(%arg0: i32) -> (i32, i32) {
    %c0_i32 = arith.constant 0 : i32
    %c0_i32_0 = arith.constant 0 : i32
    return %arg0, %c0_i32 : i32, i32
  }
}

</mosaic_0001>

<bundles_post_ra>
// kernel: mlp_forward.1
= control target key start
LH: loop header
LB: loop body
LE: loop exit
PB: predicated region body
PF: predicated region fallthrough
CT: control target
= control target key end

     0   :  { %s1250_s24 = smov 0   ;;  %s1493_s0 = inlined_call_operand.vmem [shape: bf16[208,128], index: 0, kind: input, shape index: {}]   ;;  %s1494_s1 = inlined_call_operand.vmem [shape: bf16[128,128], index: 1, kind: input, shape index: {}]   ;;  %s1495_s2 = inlined_call_operand.vmem [shape: f32[1,128], index: 2, kind: input, shape index: {}]   ;;  %s1496_s3 = inlined_call_operand.vmem [shape: bf16[128,128], index: 3, kind: input, shape index: {}]   ;;  %s1497_s4 = inlined_call_operand.vmem [shape: f32[1,128], index: 4, kind: input, shape index: {}]   ;;  %s1498_s5 = inlined_call_operand.vmem [shape: bf16[128,128], index: 5, kind: input, shape index: {}]   ;;  %s1499_s6 = inlined_call_operand.vmem [shape: f32[1,128], index: 6, kind: input, shape index: {}]   ;;  %s1500_s7 = inlined_call_operand.vmem [shape: f32[208,16], index: 7, kind: output, shape index: {}]  }
   0x1 LB: > { %s923_s25 = sadd.s32 4294967295, %s1206_s24   ;;  %p927_p0 = scmp.ge.s32.totalorder %s1206_s24, 1  ;;  %s1206_s24 = sphi %s1250_s24, %s17_s24  }
   0x2   : > { %p238_p1 = scmp.lt.s32.totalorder %s1206_s24, 3 }
   0x4   : > { %p239_p2 = pnand %p927_p0, %p238_p1 }
   0x5   : > { %v1169_v0 = vld [vmem:[%s1494_s1] sm:$0xff] (!%p239_p2)   ;;  %v1208_v1 = vmov (!%p239_p2), 0.0   ;;  %v1170_v2 = vld [vmem:[%s1494_s1 + $0x8] sm:$0xff] (!%p239_p2)   ;;  %s270_s30 = smul.u32 (!%p239_p2), 13, %s923_s25  ;;  %vm1209_vm0 = vmmov (!%p239_p2), 0   ;;  %v1171_v3 = vld [vmem:[%s1494_s1 + $0x10] sm:$0xff] (!%p239_p2)  }
   0x6   : > { %242 = sbr.rel (%p239_p2) target bundleno = 741 (0x2e5), region = 48  ;;  %1011 = vmatprep.subr.bf16.mxu0 (!%p239_p2), %v1208_v1  ;;  %1143 = vmatprep.subr.bf16.mxu1 (!%p239_p2), %v1208_v1  ;;  %v1172_v4 = vld [vmem:[%s1494_s1 + $0x18] sm:$0xff] (!%p239_p2)   ;;  %v1173_v5 = vld [vmem:[%s1494_s1 + $0x20] sm:$0xff] (!%p239_p2)   ;;  %v1174_v6 = vld [vmem:[%s1494_s1 + $0x28] sm:$0xff] (!%p239_p2)   ;;  %vm853_vm1 = vcmask (!%p239_p2), 130048  }
   0x7   : > { %1012 = vmatpush3.bf16.msra.mxu0 (!%p239_p2), %v1169_v0  ;;  %1151 = vmatpush3.bf16.msra.mxu1 (!%p239_p2), %v1169_v0  ;;  %p271_p3 = scmp.lt.s32.totalorder (!%p239_p2), %s270_s30, 25  ;;  %v1175_v7 = vld [vmem:[%s1494_s1 + $0x30] sm:$0xff] (!%p239_p2)   ;;  %v1176_v8 = vld [vmem:[%s1494_s1 + $0x38] sm:$0xff] (!%p239_p2)   ;;  %v1184_v11 = vld [vmem:[%s1496_s3] sm:$0xff] (!%p239_p2)  }
   0x8   : > { %1013 = vmatprep.subr.bf16.mxu0 (!%p239_p2), %v1208_v1  ;;  %1027 = vmatprep.mubr.msk.bf16.mxu0 (!%p239_p2), %vm1209_vm0, %v1208_v1  ;;  %v1185_v12 = vld [vmem:[%s1496_s3 + $0x8] sm:$0xff] (!%p239_p2)   ;;  %v1186_v15 = vld [vmem:[%s1496_s3 + $0x10] sm:$0xff] (!%p239_p2)   ;;  %v1187_v16 = vld [vmem:[%s1496_s3 + $0x18] sm:$0xff] (!%p239_p2)  }
   0x9   : > { %1144 = vmatprep.subr.bf16.mxu1 (!%p239_p2), %v1208_v1  ;;  %1043 = vmatprep.mubr.msk.bf16.mxu1 (!%p239_p2), %vm1209_vm0, %v1208_v1  ;;  %v1188_v19 = vld [vmem:[%s1496_s3 + $0x20] sm:$0xff] (!%p239_p2)   ;;  %v1189_v20 = vld [vmem:[%s1496_s3 + $0x28] sm:$0xff] (!%p239_p2)   ;;  %v1190_v22 = vld [vmem:[%s1496_s3 + $0x30] sm:$0xff] (!%p239_p2)  }
   0xa   : > { %v1191_v23 = vld [vmem:[%s1496_s3 + $0x38] sm:$0xff] (!%p239_p2)   ;;  %v1192_v24 = vld [vmem:[%s1498_s5] sm:$0xff] (!%p239_p2)   ;;  %v1193_v25 = vld [vmem:[%s1498_s5 + $0x8] sm:$0xff] (!%p239_p2)  }
   0xb   : > { %1014 = vmatpush3.bf16.msra.mxu0 (!%p239_p2), %v1170_v2  ;;  %1152 = vmatpush3.bf16.msra.mxu1 (!%p239_p2), %v1170_v2  ;;  %v1194_v26 = vld [vmem:[%s1498_s5 + $0x10] sm:$0xff] (!%p239_p2)   ;;  %v1195_v27 = vld [vmem:[%s1498_s5 + $0x18] sm:$0xff] (!%p239_p2)   ;;  %v1196_v28 = vld [vmem:[%s1498_s5 + $0x20] sm:$0xff] (!%p239_p2)  }
   0xc   : > { %1015 = vmatprep.subr.bf16.mxu0 (!%p239_p2), %v1208_v1  ;;  %1145 = vmatprep.subr.bf16.mxu1 (!%p239_p2), %v1208_v1  ;;  %v1197_v29 = vld [vmem:[%s1498_s5 + $0x28] sm:$0xff] (!%p239_p2)   ;;  %v1391_v30 = vld [vmem:[%s1495_s2] ss:$0 sm:$0xff] (!%p239_p2) }
   0xd   : > { %s1502_s30 = smov (!%p271_p3, %s270_s30), 25 }
   0xe   : > { %s928_s10 = sshll.u32 %s1502_s30, 2  ;;  %s929_s19 = sshll.u32 %s1502_s30, 3 }
   0xf   : > { %s1283_s13 = scalar_lea.vmem %s1493_s0, %s928_s10  ;;  %1016 = vmatpush3.bf16.msra.mxu0 %v1171_v3  ;;  %1153 = vmatpush3.bf16.msra.mxu1 %v1171_v3  ;;  %s1462_s23 = scalar_lea.vmem %s1500_s7, %s929_s19 }
  0x10   : > { %1017 = vmatprep.subr.bf16.mxu0 %v1208_v1  ;;  %1146 = vmatprep.subr.bf16.mxu1 %v1208_v1  ;;  %v1177_v9 = vld [vmem:[%s1283_s13] sm:$0xff]   ;;  %v1178_v13 = vld [vmem:[%s1283_s13 + $0x8] sm:$0xff]   ;;  %v1179_v17 = vld [vmem:[%s1283_s13 + $0x10] sm:$0xff]  }
  0x11   : > { %v1181_v10 = vld [vmem:[%s1283_s13 + $0x20] sm:$0xff]   ;;  %v1182_v14 = vld [vmem:[%s1283_s13 + $0x28] sm:$0xff]   ;;  %v1183_v18 = vld [vmem:[%s1283_s13 + $0x30] ss:$0 sps:$4 sm:$0xff]  }
  0x12   : > { %v1180_v21 = vld [vmem:[%s1283_s13 + $0x18] sm:$0xff]  }
  0x13   : > { %1018 = vmatpush3.bf16.msra.mxu0 %v1172_v4  ;;  %1154 = vmatpush3.bf16.msra.mxu1 %v1172_v4 }
  0x14   : > { %1019 = vmatprep.subr.bf16.mxu0 %v1208_v1  ;;  %1147 = vmatprep.subr.bf16.mxu1 %v1208_v1 }
  0x17   : > { %1020 = vmatpush3.bf16.msra.mxu0 %v1173_v5  ;;  %1155 = vmatpush3.bf16.msra.mxu1 %v1173_v5 }
  0x18   : > { %1021 = vmatprep.subr.bf16.mxu0 %v1208_v1  ;;  %1148 = vmatprep.subr.bf16.mxu1 %v1208_v1 }
  0x1b   : > { %1022 = vmatpush3.bf16.msra.mxu0 %v1174_v6  ;;  %1156 = vmatpush3.bf16.msra.mxu1 %v1174_v6 }
  0x1c   : > { %1023 = vmatprep.subr.bf16.mxu0 %v1208_v1  ;;  %1149 = vmatprep.subr.bf16.mxu1 %v1208_v1 }
  0x1f   : > { %1024 = vmatpush3.bf16.msra.mxu0 %v1175_v7  ;;  %1157 = vmatpush3.bf16.msra.mxu1 %v1175_v7 }
  0x20   : > { %1025 = vmatprep.subr.bf16.mxu0 %v1208_v1  ;;  %1150 = vmatprep.subr.bf16.mxu1 %v1208_v1 }
  0x23   : > { %1026 = vmatpush3.bf16.msra.mxu0 %v1176_v8  ;;  %1158 = vmatpush3.bf16.msra.mxu1 %v1176_v8 }
  0x24   : > { %1055 = vmatprep.subr.bf16.mxu1 %v1208_v1  ;;  %1099 = vmatprep.subr.bf16.mxu0 %v1208_v1 }
  0x26   : > { %1028 = vmatmul.mubr.bf16.vlgmr.msra.gmra.mrb[0].mxu0 %v1177_v9  ;;  %1044 = vmatmul.mubr.bf16.vlgmr.msra.gmra.mrb[0].mxu1 %v1181_v10 }
  0x27   : > { %1031 = vmatprep.mubr.msk.bf16.mxu0 %vm1209_vm0, %v1208_v1  ;;  %1047 = vmatprep.mubr.msk.bf16.mxu1 %vm1209_vm0, %v1208_v1 }
  0x28   : > { %1056 = vmatpush3.bf16.msra.mxu1 %v1184_v11  ;;  %1100 = vmatpush3.bf16.msra.mxu0 %v1192_v24 }
  0x29   : > { %1057 = vmatprep.subr.bf16.mxu1 %v1208_v1  ;;  %1101 = vmatprep.subr.bf16.mxu0 %v1208_v1 }
  0x2c   : > { %1058 = vmatpush3.bf16.msra.mxu1 %v1185_v12  ;;  %1102 = vmatpush3.bf16.msra.mxu0 %v1193_v25 }
  0x2d   : > { %1059 = vmatprep.subr.bf16.mxu1 %v1208_v1  ;;  %1103 = vmatprep.subr.bf16.mxu0 %v1208_v1 }
  0x2e   : > { %1032 = vmatmul.mubr.bf16.gmra.mrb[4].mxu0 %v1178_v13  ;;  %1048 = vmatmul.mubr.bf16.gmra.mrb[4].mxu1 %v1182_v14 }
  0x2f   : > { %1035 = vmatprep.mubr.msk.bf16.mxu0 %vm1209_vm0, %v1208_v1  ;;  %1051 = vmatprep.mubr.msk.bf16.mxu1 %vm1209_vm0, %v1208_v1 }
  0x30   : > { %1060 = vmatpush3.bf16.msra.mxu1 %v1186_v15  ;;  %1104 = vmatpush3.bf16.msra.mxu0 %v1194_v26 }
  0x31   : > { %1061 = vmatprep.subr.bf16.mxu1 %v1208_v1  ;;  %1105 = vmatprep.subr.bf16.mxu0 %v1208_v1 }
  0x34   : > { %1062 = vmatpush3.bf16.msra.mxu1 %v1187_v16  ;;  %1106 = vmatpush3.bf16.msra.mxu0 %v1195_v27 }
  0x35   : > { %1063 = vmatprep.subr.bf16.mxu1 %v1208_v1  ;;  %1107 = vmatprep.subr.bf16.mxu0 %v1208_v1 }
  0x36   : > { %1036 = vmatmul.mubr.bf16.gmra.mrb[8].mxu0 %v1179_v17  ;;  %1052 = vmatmul.mubr.bf16.gmra.mrb[8].mxu1 %v1183_v18 }
  0x37   : > { %1039 = vmatprep.mubr.msk.bf16.mxu0 %vm1209_vm0, %v1208_v1  ;;  %1071 = vmatprep.mubr.msk.bf16.mxu1 %vm1209_vm0, %v1208_v1 }
  0x38   : > { %1064 = vmatpush3.bf16.msra.mxu1 %v1188_v19  ;;  %1108 = vmatpush3.bf16.msra.mxu0 %v1196_v28 }
  0x39   : > { %1065 = vmatprep.subr.bf16.mxu1 %v1208_v1  ;;  %1109 = vmatprep.subr.bf16.mxu0 %v1208_v1 }
  0x3c   : > { %1066 = vmatpush3.bf16.msra.mxu1 %v1189_v20  ;;  %1110 = vmatpush3.bf16.msra.mxu0 %v1197_v29  ;;  %v1198_v29 = vld [vmem:[%s1498_s5 + $0x30] sm:$0xff]  }
  0x3d   : > { %1067 = vmatprep.subr.bf16.mxu1 %v1208_v1  ;;  %1111 = vmatprep.subr.bf16.mxu0 %v1208_v1 }
  0x3e   : > { %1040 = vmatmul.mubr.bf16.gmra.mrb[12].mxu0 %v1180_v21 }
  0x3f   : > { %1115 = vmatprep.mubr.msk.bf16.mxu0 %vm1209_vm0, %v1208_v1 }
  0x40   : > { %1068 = vmatpush3.bf16.msra.mxu1 %v1190_v22  ;;  %1112 = vmatpush3.bf16.msra.mxu0 %v1198_v29 }
  0x41   : > { %1069 = vmatprep.subr.bf16.mxu1 %v1208_v1  ;;  %1113 = vmatprep.subr.bf16.mxu0 %v1208_v1 }
  0x44   : > { %1070 = vmatpush3.bf16.msra.mxu1 %v1191_v23 }
  0xf9   : > { %v441_v31 = vpop.f32.mrb[0].mxu0  ;;  %v473_v32 = vpop.f32.mrb[0].mxu1 }
  0xfa   : > { %v442_v33 = vadd.f32 %v1391_v30, %v441_v31  ;;  %v1029_v34 = vpop.f32.mrb[1].mxu0  ;;  %v474_v35 = vadd.f32 %v1391_v30, %v473_v32  ;;  %v1045_v36 = vpop.f32.mrb[1].mxu1  ;;  %v1199_v31 = vld [vmem:[%s1498_s5 + $0x38] sm:$0xff]  }
  0xfb   : > { %v444_v37 = vpop.f32.mrb[2].mxu0  ;;  %v476_v38 = vpop.f32.mrb[2].mxu1  ;;  %1114 = vmatpush3.bf16.msra.mxu0 %v1199_v31  ;;  %v955_v31 = vld [vmem:[%s1499_s6] ss:$0 sm:$0xff] }
  0xfc   : > { %v445_v39 = vadd.f32 %v1391_v30, %v444_v37  ;;  %v1030_v40 = vpop.f32.mrb[3].mxu0  ;;  %v503_v41 = vmax.f32 %v474_v35, 0.0  ;;  %v477_v42 = vadd.f32 %v1391_v30, %v476_v38  ;;  %v1046_v43 = vpop.f32.mrb[3].mxu1  ;;  %v495_v44 = vmax.f32 %v442_v33, 0.0 }
  0xfe   : > { %v496_v45 = vmax.f32 %v445_v39, 0.0  ;;  %v504_v46 = vmax.f32 %v477_v42, 0.0 }
 0x100   : > { %v508_v47 = vpack.c.bf16 %v496_v45, %v495_v44  ;;  %v512_v48 = vpack.c.bf16 %v504_v46, %v503_v41 }
 0x101   : > { %v449_v49 = vpop.f32.mrb[4].mxu0  ;;  %v481_v50 = vpop.f32.mrb[4].mxu1 }
 0x102   : > { %v450_v51 = vadd.f32 %v1391_v30, %v449_v49  ;;  %v1033_v52 = vpop.f32.mrb[5].mxu0  ;;  %1072 = vmatmul.mubr.bf16.vlgmr.msra.gmra.mrb[12].mxu1 %v508_v47  ;;  %v482_v53 = vadd.f32 %v1391_v30, %v481_v50  ;;  %v1049_v54 = vpop.f32.mrb[5].mxu1 }
 0x103   : > { %v452_v55 = vpop.f32.mrb[6].mxu0  ;;  %1075 = vmatprep.mubr.msk.bf16.mxu1 %vm1209_vm0, %v1208_v1  ;;  %v484_v56 = vpop.f32.mrb[6].mxu1 }
 0x104   : > { %v453_v57 = vadd.f32 %v1391_v30, %v452_v55  ;;  %v1034_v58 = vpop.f32.mrb[7].mxu0  ;;  %v505_v59 = vmax.f32 %v482_v53, 0.0  ;;  %v485_v60 = vadd.f32 %v1391_v30, %v484_v56  ;;  %v1050_v61 = vpop.f32.mrb[7].mxu1  ;;  %v497_v62 = vmax.f32 %v450_v51, 0.0 }
 0x106   : > { %v498_v63 = vmax.f32 %v453_v57, 0.0  ;;  %v506_v0 = vmax.f32 %v485_v60, 0.0 }
 0x108   : > { %v509_v2 = vpack.c.bf16 %v498_v63, %v497_v62  ;;  %v513_v3 = vpack.c.bf16 %v506_v0, %v505_v59 }
 0x109   : > { %v457_v4 = vpop.f32.mrb[8].mxu0  ;;  %v489_v5 = vpop.f32.mrb[8].mxu1 }
 0x10a   : > { %v458_v6 = vadd.f32 %v1391_v30, %v457_v4  ;;  %v1037_v7 = vpop.f32.mrb[9].mxu0  ;;  %1076 = vmatmul.mubr.bf16.gmra.mrb[16].mxu1 %v509_v2  ;;  %v1053_v8 = vpop.f32.mrb[9].mxu1  ;;  %v490_v26 = vadd.f32 %v1391_v30, %v489_v5 }
 0x10b   : > { %v460_v9 = vpop.f32.mrb[10].mxu0  ;;  %1079 = vmatprep.mubr.msk.bf16.mxu1 %vm1209_vm0, %v1208_v1  ;;  %v492_v10 = vpop.f32.mrb[10].mxu1 }
 0x10c   : > { %v461_v11 = vadd.f32 %v1391_v30, %v460_v9  ;;  %v1038_v12 = vpop.f32.mrb[11].mxu0  ;;  %v1054_v13 = vpop.f32.mrb[11].mxu1  ;;  %v499_v14 = vmax.f32 %v458_v6, 0.0  ;;  %v507_v27 = vmax.f32 %v490_v26, 0.0 }
 0x10e   : > { %v500_v15 = vmax.f32 %v461_v11, 0.0  ;;  %v514_v28 = vpack.c.bf16 %v507_v27, %v507_v27 }
 0x110   : > { %v510_v16 = vpack.c.bf16 %v500_v15, %v499_v14 }
 0x111   : > { %v465_v17 = vpop.f32.mrb[12].mxu0 }
 0x112   : > { %v466_v18 = vadd.f32 %v1391_v30, %v465_v17  ;;  %v1041_v19 = vpop.f32.mrb[13].mxu0  ;;  %1080 = vmatmul.mubr.bf16.gmra.mrb[20].mxu1 %v510_v16 }
 0x113   : > { %v468_v20 = vpop.f32.mrb[14].mxu0  ;;  %1083 = vmatprep.mubr.msk.bf16.mxu1 %vm1209_vm0, %v1208_v1 }
 0x114   : > { %v469_v21 = vadd.f32 %v1391_v30, %v468_v20  ;;  %v1042_v22 = vpop.f32.mrb[15].mxu0  ;;  %v501_v23 = vmax.f32 %v466_v18, 0.0  ;;  %v1428_v30 = vld [vmem:[%s1497_s4] ss:$0 sm:$0xff] }
 0x116   : > { %v502_v24 = vmax.f32 %v469_v21, 0.0 }
 0x118   : > { %v511_v25 = vpack.c.bf16 %v502_v24, %v501_v23 }
 0x11a   : > { %1084 = vmatmul.mubr.bf16.gmra.mrb[24].mxu1 %v511_v25 }
 0x11b   : > { %1087 = vmatprep.mubr.msk.bf16.mxu1 %vm1209_vm0, %v1208_v1 }
 0x122   : > { %1088 = vmatmul.mubr.bf16.gmra.mrb[28].mxu1 %v512_v48 }
 0x123   : > { %1091 = vmatprep.mubr.msk.bf16.mxu1 %vm1209_vm0, %v1208_v1 }
 0x12a   : > { %1092 = vmatmul.mubr.bf16.gmra.mrb[32].mxu1 %v513_v3 }
 0x12b   : > { %1095 = vmatprep.mubr.msk.bf16.mxu1 %vm1209_vm0, %v1208_v1 }
 0x132   : > { %1096 = vmatmul.mubr.bf16.gmra.mrb[36].mxu1 %v514_v28 }
 0x1d5   : > { %v620_v32 = vpop.f32.mrb[12].mxu1 }
 0x1d6   : > { %v621_v33 = vadd.f32 %v1428_v30, %v620_v32  ;;  %v1073_v34 = vpop.f32.mrb[13].mxu1 }
 0x1d7   : > { %v623_v35 = vpop.f32.mrb[14].mxu1 }
 0x1d8   : > { %v624_v36 = vadd.f32 %v1428_v30, %v623_v35  ;;  %v1074_v37 = vpop.f32.mrb[15].mxu1  ;;  %v674_v38 = vmax.f32 %v621_v33, 0.0 }
 0x1da   : > { %v675_v39 = vmax.f32 %v624_v36, 0.0 }
 0x1dc   : > { %v687_v40 = vpack.c.bf16 %v675_v39, %v674_v38 }
 0x1dd   : > { %v628_v41 = vpop.f32.mrb[16].mxu1 }
 0x1de   : > { %v629_v42 = vadd.f32 %v1428_v30, %v628_v41  ;;  %v1077_v43 = vpop.f32.mrb[17].mxu1  ;;  %1116 = vmatmul.mubr.bf16.vlgmr.msra.gmra.mrb[16].mxu0 %v687_v40 }
 0x1df   : > { %v631_v44 = vpop.f32.mrb[18].mxu1  ;;  %1119 = vmatprep.mubr.msk.bf16.mxu0 %vm1209_vm0, %v1208_v1 }
 0x1e0   : > { %v632_v45 = vadd.f32 %v1428_v30, %v631_v44  ;;  %v1078_v46 = vpop.f32.mrb[19].mxu1  ;;  %v676_v47 = vmax.f32 %v629_v42, 0.0 }
 0x1e2   : > { %v677_v48 = vmax.f32 %v632_v45, 0.0 }
 0x1e4   : > { %v688_v49 = vpack.c.bf16 %v677_v48, %v676_v47 }
 0x1e5   : > { %v636_v50 = vpop.f32.mrb[20].mxu1 }
 0x1e6   : > { %v637_v51 = vadd.f32 %v1428_v30, %v636_v50  ;;  %v1081_v52 = vpop.f32.mrb[21].mxu1  ;;  %1120 = vmatmul.mubr.bf16.gmra.mrb[20].mxu0 %v688_v49 }
 0x1e7   : > { %v639_v53 = vpop.f32.mrb[22].mxu1  ;;  %1123 = vmatprep.mubr.msk.bf16.mxu0 %vm1209_vm0, %v1208_v1 }
 0x1e8   : > { %v640_v54 = vadd.f32 %v1428_v30, %v639_v53  ;;  %v1082_v55 = vpop.f32.mrb[23].mxu1  ;;  %v678_v56 = vmax.f32 %v637_v51, 0.0 }
 0x1ea   : > { %v679_v57 = vmax.f32 %v640_v54, 0.0 }
 0x1ec   : > { %v689_v58 = vpack.c.bf16 %v679_v57, %v678_v56 }
 0x1ed   : > { %v644_v59 = vpop.f32.mrb[24].mxu1 }
 0x1ee   : > { %v645_v60 = vadd.f32 %v1428_v30, %v644_v59  ;;  %v1085_v61 = vpop.f32.mrb[25].mxu1  ;;  %1124 = vmatmul.mubr.bf16.gmra.mrb[24].mxu0 %v689_v58 }
 0x1ef   : > { %v647_v62 = vpop.f32.mrb[26].mxu1  ;;  %1127 = vmatprep.mubr.msk.bf16.mxu0 %vm1209_vm0, %v1208_v1 }
 0x1f0   : > { %v648_v63 = vadd.f32 %v1428_v30, %v647_v62  ;;  %v1086_v0 = vpop.f32.mrb[27].mxu1  ;;  %v680_v2 = vmax.f32 %v645_v60, 0.0 }
 0x1f2   : > { %v681_v3 = vmax.f32 %v648_v63, 0.0 }
 0x1f4   : > { %v690_v4 = vpack.c.bf16 %v681_v3, %v680_v2 }
 0x1f5   : > { %v652_v5 = vpop.f32.mrb[28].mxu1 }
 0x1f6   : > { %v653_v6 = vadd.f32 %v1428_v30, %v652_v5  ;;  %v1089_v7 = vpop.f32.mrb[29].mxu1  ;;  %1128 = vmatmul.mubr.bf16.gmra.mrb[28].mxu0 %v690_v4 }
 0x1f7   : > { %v655_v8 = vpop.f32.mrb[30].mxu1  ;;  %1131 = vmatprep.mubr.msk.bf16.mxu0 %vm1209_vm0, %v1208_v1 }
 0x1f8   : > { %v656_v9 = vadd.f32 %v1428_v30, %v655_v8  ;;  %v1090_v10 = vpop.f32.mrb[31].mxu1  ;;  %v682_v11 = vmax.f32 %v653_v6, 0.0 }
 0x1fa   : > { %v683_v12 = vmax.f32 %v656_v9, 0.0 }
 0x1fc   : > { %v691_v13 = vpack.c.bf16 %v683_v12, %v682_v11 }
 0x1fd   : > { %v660_v14 = vpop.f32.mrb[32].mxu1 }
 0x1fe   : > { %v661_v15 = vadd.f32 %v1428_v30, %v660_v14  ;;  %v1093_v16 = vpop.f32.mrb[33].mxu1  ;;  %1132 = vmatmul.mubr.bf16.gmra.mrb[32].mxu0 %v691_v13 }
 0x1ff   : > { %v663_v17 = vpop.f32.mrb[34].mxu1  ;;  %1135 = vmatprep.mubr.msk.bf16.mxu0 %vm1209_vm0, %v1208_v1 }
 0x200   : > { %v664_v18 = vadd.f32 %v1428_v30, %v663_v17  ;;  %v1094_v19 = vpop.f32.mrb[35].mxu1  ;;  %v684_v20 = vmax.f32 %v661_v15, 0.0 }
 0x202   : > { %v685_v21 = vmax.f32 %v664_v18, 0.0 }
 0x204   : > { %v692_v22 = vpack.c.bf16 %v685_v21, %v684_v20 }
 0x205   : > { %v668_v23 = vpop.f32.mrb[36].mxu1 }
 0x206   : > { %v669_v24 = vadd.f32 %v1428_v30, %v668_v23  ;;  %v1097_v25 = vpop.f32.mrb[37].mxu1  ;;  %1136 = vmatmul.mubr.bf16.gmra.mrb[36].mxu0 %v692_v22 }
 0x207   : > { %v671_v26 = vpop.f32.mrb[38].mxu1  ;;  %1139 = vmatprep.mubr.msk.bf16.mxu0 %vm1209_vm0, %v1208_v1 }
 0x208   : > { %v686_v27 = vmax.f32 %v669_v24, 0.0  ;;  %v1098_v28 = vpop.f32.mrb[39].mxu1 }
 0x20a   : > { %v693_v29 = vpack.c.bf16 %v686_v27, %v686_v27 }
 0x20e   : > { %1140 = vmatmul.mubr.bf16.gmra.mrb[40].mxu0 %v693_v29 }
 0x2b1   : > { %v799_v30 = vpop.f32.mrb[16].mxu0 }
 0x2b2   : > { %v800_v1 = vadd.f32 %v955_v31, %v799_v30  ;;  %v1117_v32 = vpop.f32.mrb[17].mxu0 }
 0x2b3   : > { %v802_v33 = vpop.f32.mrb[18].mxu0 }
 0x2b4   : > { %854 = vst.msk [vmem:[%s1462_s23] sm:$0xff] %vm853_vm1, %v800_v1  ;;  %v803_v34 = vadd.f32 %v955_v31, %v802_v33  ;;  %v1118_v35 = vpop.f32.mrb[19].mxu0 }
 0x2b6   : > { %855 = vst.msk [vmem:[%s1462_s23 + $0x8] sm:$0xff] %vm853_vm1, %v803_v34 }
 0x2b9   : > { %v807_v36 = vpop.f32.mrb[20].mxu0 }
 0x2ba   : > { %v808_v37 = vadd.f32 %v955_v31, %v807_v36  ;;  %v1121_v38 = vpop.f32.mrb[21].mxu0 }
 0x2bb   : > { %v810_v39 = vpop.f32.mrb[22].mxu0 }
 0x2bc   : > { %856 = vst.msk [vmem:[%s1462_s23 + $0x10] sm:$0xff] %vm853_vm1, %v808_v37  ;;  %v811_v40 = vadd.f32 %v955_v31, %v810_v39  ;;  %v1122_v41 = vpop.f32.mrb[23].mxu0 }
 0x2be   : > { %857 = vst.msk [vmem:[%s1462_s23 + $0x18] sm:$0xff] %vm853_vm1, %v811_v40 }
 0x2c1   : > { %v815_v42 = vpop.f32.mrb[24].mxu0 }
 0x2c2   : > { %v816_v43 = vadd.f32 %v955_v31, %v815_v42  ;;  %v1125_v44 = vpop.f32.mrb[25].mxu0 }
 0x2c3   : > { %v818_v45 = vpop.f32.mrb[26].mxu0 }
 0x2c4   : > { %858 = vst.msk [vmem:[%s1462_s23 + $0x20] sm:$0xff] %vm853_vm1, %v816_v43  ;;  %v819_v46 = vadd.f32 %v955_v31, %v818_v45  ;;  %v1126_v47 = vpop.f32.mrb[27].mxu0 }
 0x2c6   : > { %859 = vst.msk [vmem:[%s1462_s23 + $0x28] sm:$0xff] %vm853_vm1, %v819_v46 }
 0x2c9   : > { %v823_v48 = vpop.f32.mrb[28].mxu0 }
 0x2ca   : > { %v824_v49 = vadd.f32 %v955_v31, %v823_v48  ;;  %v1129_v50 = vpop.f32.mrb[29].mxu0 }
 0x2cb   : > { %v826_v51 = vpop.f32.mrb[30].mxu0 }
 0x2cc   : > { %860 = vst.msk [vmem:[%s1462_s23 + $0x30] sm:$0xff] %vm853_vm1, %v824_v49  ;;  %v827_v52 = vadd.f32 %v955_v31, %v826_v51  ;;  %v1130_v53 = vpop.f32.mrb[31].mxu0 }
 0x2ce   : > { %861 = vst.msk [vmem:[%s1462_s23 + $0x38] sm:$0xff] %vm853_vm1, %v827_v52 }
 0x2d1   : > { %v831_v54 = vpop.f32.mrb[32].mxu0 }
 0x2d2   : > { %v832_v55 = vadd.f32 %v955_v31, %v831_v54  ;;  %v1133_v56 = vpop.f32.mrb[33].mxu0 }
 0x2d3   : > { %v834_v57 = vpop.f32.mrb[34].mxu0 }
 0x2d4   : > { %862 = vst.msk [vmem:[%s1462_s23 + $0x40] sm:$0xff] %vm853_vm1, %v832_v55  ;;  %v835_v58 = vadd.f32 %v955_v31, %v834_v57  ;;  %v1134_v59 = vpop.f32.mrb[35].mxu0 }
 0x2d6   : > { %863 = vst.msk [vmem:[%s1462_s23 + $0x48] sm:$0xff] %vm853_vm1, %v835_v58 }
 0x2d9   : > { %v839_v60 = vpop.f32.mrb[36].mxu0 }
 0x2da   : > { %v840_v61 = vadd.f32 %v955_v31, %v839_v60  ;;  %v1137_v62 = vpop.f32.mrb[37].mxu0 }
 0x2db   : > { %v842_v63 = vpop.f32.mrb[38].mxu0 }
 0x2dc   : > { %864 = vst.msk [vmem:[%s1462_s23 + $0x50] sm:$0xff] %vm853_vm1, %v840_v61  ;;  %v843_v0 = vadd.f32 %v955_v31, %v842_v63  ;;  %v1138_v2 = vpop.f32.mrb[39].mxu0 }
 0x2de   : > { %865 = vst.msk [vmem:[%s1462_s23 + $0x58] sm:$0xff] %vm853_vm1, %v843_v0 }
 0x2e1   : > { %v847_v3 = vpop.f32.mrb[40].mxu0 }
 0x2e2   : > { %v848_v4 = vadd.f32 %v955_v31, %v847_v3  ;;  %v1141_v5 = vpop.f32.mrb[41].mxu0 }
 0x2e3   : > { %v850_v6 = vpop.f32.mrb[42].mxu0 }
 0x2e4   : > { %866 = vst.msk [vmem:[%s1462_s23 + $0x60] sm:$0xff] %vm853_vm1, %v848_v4  ;;  %v1142_v7 = vpop.f32.mrb[43].mxu0 }
 0x2e5 PF: > { %s17_s24 = sadd.s32 1, %s1206_s24  }
 0x2e6   : > { %p14_p4 = scmp.ge.s32.totalorder %s17_s24, 4  }
 0x2e8   :  { %16 = sbr.rel (!%p14_p4) target bundleno = 1 (0x1), region = 78 }

</bundles_post_ra>
